<compile_context>
chip_gen: v7x
topology: tpu7x:2x2x1
jax: 0.10.0
libtpu: 0.0.40
codegen_flags: <defaults>
</compile_context>

<pallas_src>
import jax
import jax.numpy as jnp
from jax.experimental import pallas as pl
from jax.experimental.pallas import tpu as pltpu

_LANE_WIDTHS = (512, 256, 128)   # lane-dense last dims (multiples of 128)
_SMALL_BYTES = 4 << 20           # below this, fused XLA beats a Pallas call
_MAX_TILE_BYTES = 8 << 20        # per-block cap (review: 4-8 MiB tiles)
_MIN_GRID = 4                    # keep >= 4 blocks so both v7x TCs stream
_ROW_ALIGN = 32                  # covers f32(8)/bf16(16)/int8(32) sublane tiling


def _round_up(n, m):
    return (n + m - 1) // m * m


def _vmem_budget_bytes():
    """Per-kernel VMEM budget derived from the chip, with ~1/3 headroom."""
    try:
        phys = pltpu.get_tpu_info().vmem_capacity_bytes
    except Exception:
        phys = 64 << 20          # conservative fallback: v7x per-TC VMEM
    return min((phys * 2) // 3, 96 << 20)


def _loss_normalizer_kernel(x_ref, o_ref):
    x = x_ref[...]
    # Forward values of x / detach(x) * 10000. Pure HBM-bandwidth-bound:
    # the divide rides otherwise-idle VALU slots under the DMA bottleneck.
    o_ref[...] = (x / x) * jnp.asarray(10000.0, dtype=x.dtype)


def _loss_normalizer_pallas(x, w):
    """Pallas path: lane-dense (rows, w) view, 1-D pipelined row-tiled grid.

    Requires x.size % w == 0 (enforced by the dispatcher), so no wrapper-side
    padding or slicing (and therefore no extra HBM round trips) is needed.
    """
    orig_shape = x.shape
    dtype = x.dtype
    n = x.size
    itemsize = jnp.dtype(dtype).itemsize
    rows = n // w
    x2d = x.reshape(rows, w)

    budget = _vmem_budget_bytes()
    # in + out blocks, each double-buffered => 4x the tile bytes resident.
    tile_bytes_cap = min(budget // 4, _MAX_TILE_BYTES)
    tr_cap = max(_ROW_ALIGN,
                 (tile_bytes_cap // (w * itemsize)) // _ROW_ALIGN * _ROW_ALIGN)
    # Keep at least _MIN_GRID blocks so v7x's two TensorCores both get work
    # (harmless on single-TC v5e/v6e).
    tr_fair = max(_ROW_ALIGN, _round_up(pl.cdiv(rows, _MIN_GRID), _ROW_ALIGN))
    tr = min(tr_cap, tr_fair)
    grid = pl.cdiv(rows, tr)     # ragged last block handled by Pallas

    tile_bytes = tr * w * itemsize
    vmem_limit = int(min(budget, 4 * tile_bytes + (8 << 20)))

    out2d = pl.pallas_call(
        _loss_normalizer_kernel,
        out_shape=jax.ShapeDtypeStruct((rows, w), dtype),
        grid=(grid,),
        in_specs=[pl.BlockSpec((tr, w), lambda i: (i, 0))],
        out_specs=pl.BlockSpec((tr, w), lambda i: (i, 0)),
        compiler_params=pltpu.CompilerParams(
            dimension_semantics=("parallel",),
            vmem_limit_bytes=vmem_limit),
        cost_estimate=pl.CostEstimate(
            flops=2 * n, transcendentals=0,
            bytes_accessed=2 * n * itemsize),
    )(x2d)

    return out2d.reshape(orig_shape)


def _pick_lane_width(n):
    for w in _LANE_WIDTHS:
        if n > 0 and n % w == 0:
            return w
    return None


def _loss_normalizer_fwd_values(x):
    w = _pick_lane_width(x.size)
    if w is None or x.size * jnp.dtype(x.dtype).itemsize < _SMALL_BYTES:
        # Tiny or lane-ragged tensors: one fused XLA elementwise is already
        # at the HBM roofline with no launch cost and no pad/slice copies.
        return (x / jax.lax.stop_gradient(x)) * jnp.asarray(10000.0, x.dtype)
    return _loss_normalizer_pallas(x, w)


@jax.custom_vjp
def loss_normalizer(x):
    """y = x / stop_gradient(x) * 10000 (forward values: (x/x) * 10000)."""
    return _loss_normalizer_fwd_values(x)


def _ln_fwd(x):
    return _loss_normalizer_fwd_values(x), x


def _ln_bwd(x, g):
    # d/dx [ x / stop_gradient(x) * 10000 ] = 10000 / x
    return (g * (jnp.asarray(10000.0, x.dtype) / x),)


loss_normalizer.defvjp(_ln_fwd, _ln_bwd)


class LossNormalizer:
    """JAX/Pallas port of the PyTorch LossNormalizer module."""
    name = 'loss_normalizer'

    def __init__(self, logger=None, sizes=None, input='loss', **kwargs):
        # TODO(synk): check_leftargs is a host-side arg validator; no kernel
        # equivalent needed.
        self.input = input

    def __call__(self, batch):
        batch[self.input] = loss_normalizer(batch[self.input])
        return batch


if __name__ == "__main__":
    key = jax.random.PRNGKey(0)
    k1, k2, k3, k4 = jax.random.split(key, 4)

    # (A) Module-shaped tiny loss map -> fused-XLA dispatch path.
    x_small = jax.random.uniform(k1, (2, 4, 16, 16), dtype=jnp.float32,
                                 minval=0.1, maxval=2.0)
    module = LossNormalizer(logger=None, sizes=None, input='loss')
    batch = module({'loss': x_small})
    y_small = jax.block_until_ready(batch['loss'])
    assert y_small.shape == x_small.shape and y_small.dtype == x_small.dtype
    assert jnp.allclose(y_small, (x_small / x_small) * 10000.0,
                        rtol=1e-6, atol=1e-3)

    # (B) Gradient through custom_vjp: dy/dx = 10000 / x.
    g = jax.block_until_ready(
        jax.grad(lambda x: loss_normalizer(x).sum())(x_small))
    assert jnp.allclose(g, 10000.0 / x_small, rtol=1e-5, atol=1e-2)

    # (C) Pallas kernel, lane-aligned rows divisible by the tile (grid of 4).
    x_big = jax.random.uniform(k2, (8, 16, 64, 64), dtype=jnp.float32,
                               minval=0.1, maxval=2.0)
    y_big = jax.block_until_ready(_loss_normalizer_pallas(x_big, 512))
    assert y_big.shape == x_big.shape and y_big.dtype == x_big.dtype
    assert jnp.allclose(y_big, (x_big / x_big) * 10000.0,
                        rtol=1e-6, atol=1e-3)

    # (D) Pallas kernel with a ragged last row-block (rows=1000, tr=256):
    #     exercises the pl.cdiv grid / dropped OOB writes, no jnp.pad copies.
    x_rag = jax.random.uniform(k3, (4, 250, 512), dtype=jnp.float32,
                               minval=0.1, maxval=2.0)
    y_rag = jax.block_until_ready(_loss_normalizer_pallas(x_rag, 512))
    assert y_rag.shape == x_rag.shape and y_rag.dtype == x_rag.dtype
    assert jnp.allclose(y_rag, (x_rag / x_rag) * 10000.0,
                        rtol=1e-6, atol=1e-3)

    # (E) Lane-ragged shape via the public API -> routed to the XLA path
    #     (no pad + slice HBM round trips).
    x_odd = jax.random.uniform(k4, (2, 4, 33, 47), dtype=jnp.float32,
                               minval=0.1, maxval=2.0)
    y_odd = jax.block_until_ready(loss_normalizer(x_odd))
    assert y_odd.shape == x_odd.shape and y_odd.dtype == x_odd.dtype
    assert jnp.allclose(y_odd, (x_odd / x_odd) * 10000.0,
                        rtol=1e-6, atol=1e-3)

    print("KERNEL_OK")
</pallas_src>

<mosaic_0001>
module attributes {stable_mosaic.version = 11 : i64} {
  func.func @_loss_normalizer_kernel(%arg0: i32, %arg1: memref<256x512xf32, #tpu.memory_space<vmem>>, %arg2: memref<256x512xf32, #tpu.memory_space<vmem>>) attributes {dimension_semantics = [#tpu.dimension_semantics<parallel>], iteration_bounds = array<i64: 4>, scalar_prefetch = 0 : i64, scratch_operands = 0 : i64, tpu.core_type = #tpu.core_type<tc>, window_params = [{transform_indices = @transform_0, window_bounds = array<i64: 256, 512>}, {transform_indices = @transform_1, window_bounds = array<i64: 256, 512>}]} {
    %c0 = arith.constant 0 : index
    %c0_0 = arith.constant 0 : index
    %0 = vector.load %arg1[%c0, %c0_0] : memref<256x512xf32, #tpu.memory_space<vmem>>, vector<256x512xf32>
    %1 = arith.divf %0, %0 : vector<256x512xf32>
    %cst = arith.constant 1.000000e+04 : f32
    %2 = vector.broadcast %cst : f32 to vector<256x512xf32>
    %3 = arith.mulf %1, %2 : vector<256x512xf32>
    %c0_1 = arith.constant 0 : index
    %c0_2 = arith.constant 0 : index
    %4 = vector.load %arg2[%c0_1, %c0_2] : memref<256x512xf32, #tpu.memory_space<vmem>>, vector<256x512xf32>
    tpu.vector_store %arg2[%c0_1, %c0_2], %3 {strides = array<i32>} : memref<256x512xf32, #tpu.memory_space<vmem>>, vector<256x512xf32>,
    return
  }
  func.func @transform_0(%arg0: i32) -> (i32, i32) {
    %c0_i32 = arith.constant 0 : i32
    %c0_i32_0 = arith.constant 0 : i32
    return %arg0, %c0_i32 : i32, i32
  }
  func.func @transform_1(%arg0: i32) -> (i32, i32) {
    %c0_i32 = arith.constant 0 : i32
    %c0_i32_0 = arith.constant 0 : i32
    return %arg0, %c0_i32 : i32, i32
  }
}

</mosaic_0001>

<bundles_post_ra>
// kernel: tpu_custom_call.1
= control target key start
LH: loop header
LB: loop body
LE: loop exit
PB: predicated region body
PF: predicated region fallthrough
CT: control target
= control target key end

     0   :  { %6 = vsyncpa [#allocation3], 0  ;;  %s2199_s0 = inlined_call_operand.hbm [shape: f32[1024,512], index: 0, kind: input, shape index: {}]   ;;  %s2200_s1 = inlined_call_operand.hbm [shape: f32[1024,512], index: 1, kind: output, shape index: {}]  }
   0x1   :  { %8 = vsyncpa [#allocation3 + $0x1], 0 }
   0x2   :  { %9 = vsyncpa [#allocation4], 0 }
   0x3   :  { %11 = vsyncpa [#allocation4 + $0x1], 0  ;;  %s1306_s6 = smov 0   ;;  %s1308_s7 = smov 0  }
   0x4   :  { %s1310_s8 = smov 0   ;;  %s1312_s9 = smov 0  }
   0x5 LB: > { %s1327_s10 = sadd.s32 4294967295, %s1288_s9   ;;  %s866_s11 = sadd.s32 4294967294, %s1288_s9   ;;  %s1288_s9 = sphi %s1312_s9, %s2212_s9   ;;  %s1284_s8 = sphi %s1310_s8, %s2211_s8   ;;  %s1280_s7 = sphi %s1308_s7, %s2210_s7   ;;  %s1276_s6 = sphi %s1306_s6, %s2209_s6  }
   0x6   : > { %s1331_s12 = sadd.s32 1, %s1288_s9   ;;  %s24_s13 = sadd.s32 1, %s1284_s8 }
   0x7   : > { %s21_s14 = ssub.s32 %s1288_s9, %s1331_s12  ;;  %p31_p0 = scmp.ne.s32.totalorder %s1284_s8, %s1280_s7 }
   0x8   : > { %p22_p1 = scmp.eq.s32.totalorder %s21_s14, 0  ;;  %p32_p2 = scmp.eq.s32.totalorder %s1288_s9, 0 }
   0x9   : > { %p37_p3 = scmp.ne.s32.totalorder %s1280_s7, %s1276_s6  ;;  %p38_p4 = scmp.eq.s32.totalorder %s1327_s10, 0 }
   0xa   : > { %s1343_s15 = scalar_select %p22_p1, %s1284_s8, %s24_s13  }
   0xb   : > { %p1345_p5 = por %p32_p2, %p31_p0  ;;  %p1349_p6 = por %p38_p4, %p37_p3 }
   0xc   : > { %p61_p7 = scmp.eq.s32.totalorder %s1327_s10, 3  ;;  %p67_p8 = scmp.eq.s32.totalorder %s866_s11, 3 }
   0xd   : > { %p898_p9 = scmp.lt.s32.totalorder %s1288_s9, 4  ;;  %s87_s20 = sand.u32 1, %s1284_s8  }
   0xe   : > { %p1355_p10 = por %p61_p7, %p31_p0  ;;  %p1359_p11 = por %p67_p8, %p37_p3 }
   0xf   : > { %s883_s21 = sshll.u32 %s1288_s9, 14  ;;  %s869_s22 = sshll.u32 %s87_s20, 10 }
  0x10   : > { %s2204_s18 = scalar_select %p1355_p10, 1, 0 }
  0x11   : > { %s2205_s19 = scalar_select %p1359_p11, 1, 0 }
  0x12   : > { %s1368_s25 = scalar_lea.hbm %s2199_s0, %s883_s21  ;;  %s91_s26 = scalar_lea.vmem [#allocation2], %s869_s22 }
  0x13   : > { %s99_s27 = sshll.u32 %s91_s26, 4  ;;  %p1372_p12 = pnand %p898_p9, %p1345_p5  ;;  %s1376_s27 = int_to_ptr.vmem [resolvable:$true] %s99_s27 }
  0x14   : > { %s1378_s29 = scalar_lea.sflag [#allocation3], %s87_s20  ;;  %s1192_s30 = scalar_lea.hbm %s1368_s25, 16384 }
  0x15   : > { %p1193_p13 = scmp.ne.s32.totalorder %s1368_s25, %s1192_s30  ;;  %p1194_p0 = pneg %p1372_p12 }
  0x16   : > { %s1197_s4 = scalar_lea.hbm %s2199_s0, 65536  ;;  %p1198_p3 = scmp.lt.u32.totalorder %s1368_s25, %s2199_s0 }
  0x17   : > { %p1195_p1 = pnand %p1194_p0, %p1193_p13  ;;  %p1199_p4 = scmp.lt.u32.totalorder %s1197_s4, %s1192_s30 }
  0x18   : > { %p1201_p7 = scmp.lt.u32.totalorder %s1192_s30, %s1368_s25 }
  0x19   : > { %p1196_p2 = pneg %p1195_p1  ;;  %p1200_p5 = por %p1199_p4, %p1198_p3 }
  0x1b   : > { %p1202_p8 = por %p1201_p7, %p1200_p5 }
  0x1d   : > { %p1203_p9 = pnand %p1202_p8, %p1196_p2 }
  0x1f   : > { %1206 = shalt.err (!%p1203_p9)
}
  0x20   : > { %s1207_s13 = scalar_lea.vmem %s1376_s27, 16384  ;;  %s1290_s14 = smov [#allocation2]  }
  0x21   : > { %p1208_p13 = scmp.ne.s32.totalorder %s1376_s27, %s1207_s13  ;;  %s1212_s16 = sshll.u32 %s1290_s14, 4  ;;  %s1213_s16 = int_to_ptr.vmem [resolvable:$false] %s1212_s16 }
  0x22   : > { %s1214_s20 = scalar_lea.vmem %s1213_s16, 32768  ;;  %p1215_p10 = scmp.lt.s32.totalorder %s1376_s27, %s1213_s16 }
  0x23   : > { %p1210_p1 = pnand %p1208_p13, %p1194_p0  ;;  %p1216_p3 = scmp.lt.s32.totalorder %s1214_s20, %s1207_s13 }
  0x25   : > { %p1211_p11 = pneg %p1210_p1  ;;  %p1217_p4 = por %p1216_p3, %p1215_p10 }
  0x27   : > { %p1218_p5 = pnand %p1217_p4, %p1211_p11 }
  0x29   : > { %1221 = shalt.err (!%p1218_p5)
}
  0x2a   : > { %s1291_s21 = smov 512   ;;  %s1292_s22 = smov 32  }
  0x2b   : > { %893 = dma.hbm_to_vmem [thread:$0]  (!%p1372_p12), %s1368_s25, 16384, %s1376_s27, %s1378_s29, %s1291_s21, %s1291_s21, %s1292_s22  }
  0x2c   : > { %p873_p0 = scmp.ge.s32.totalorder %s1288_s9, 1  ;;  %p107_p2 = scmp.lt.s32.totalorder %s1288_s9, 5 }
  0x2e   : > { %p108_p7 = pnand %p873_p0, %p107_p2 }
  0x2f   : > { %s1409_s23 = sand.u32 (!%p108_p7), 1, %s1280_s7  }
  0x30   : > { %111 = sbr.rel (%p108_p7) target bundleno = 214 (0xd6), region = 24  ;;  %s874_s24 = sshll.u32 (!%p108_p7), %s1409_s23, 10 }
  0x31   : > { %s114_s26 = scalar_lea.sflag (!%p108_p7), [#allocation3], %s1409_s23  ;;  %s1415_s30 = scalar_lea.vmem (!%p108_p7), [#allocation2], %s874_s24 }
  0x37   : > { %1267 = dma.done.wait (%p1349_p6), %s114_s26, 16384  }
  0x38   : > { %1269 = vsyncadd (%p1349_p6), %s114_s26, 4294950912  ;;  %v138_v0 = vld [vmem:[%s1415_s30] sm:$0xff]  ;;  %v139_v1 = vld [vmem:[%s1415_s30 + $0x8] sm:$0xff]  ;;  %s1462_s17 = scalar_lea.vmem [#allocation5], %s874_s24  ;;  %s885_s25 = sshll.u32 %s1327_s10, 14 }
  0x39   : > { %v140_v2 = vld [vmem:[%s1415_s30 + $0x10] sm:$0xff]  ;;  %936 = vrcp.f32 %v138_v0  ;;  %v141_v3 = vld [vmem:[%s1415_s30 + $0x18] sm:$0xff]  ;;  %v142_v4 = vld [vmem:[%s1415_s30 + $0x20] sm:$0xff]  ;;  %s793_s27 = sshll.u32 %s1462_s17, 4  ;;  %s2151_s2 = scalar_lea.hbm %s2200_s1, %s885_s25  ;;  %s2153_s27 = int_to_ptr.vmem [resolvable:$true] %s793_s27 }
  0x3a   : > { %938 = vrcp.f32 %v139_v1  ;;  %v143_v5 = vld [vmem:[%s1415_s30 + $0x28] sm:$0xff]  ;;  %v144_v6 = vld [vmem:[%s1415_s30 + $0x30] sm:$0xff]  ;;  %v145_v7 = vld [vmem:[%s1415_s30 + $0x38] sm:$0xff]  ;;  %s779_s10 = scalar_lea.sflag [#allocation4], %s1409_s23  ;;  %s1222_s3 = scalar_lea.vmem %s2153_s27, 16384 }
  0x3b   : > { %940 = vrcp.f32 %v140_v2  ;;  %v146_v8 = vld [vmem:[%s1415_s30 + $0x40] sm:$0xff]  ;;  %v147_v9 = vld [vmem:[%s1415_s30 + $0x48] sm:$0xff]  ;;  %v1432_v10 = vld [vmem:[%s1415_s30 + $0x50] sm:$0xff]  ;;  %p1223_p6 = scmp.ne.s32.totalorder %s2153_s27, %s1222_s3  ;;  %p2207_p10 = scmp.ne.s32.totalorder %s2204_s18, 0 }
  0x3c   : > { %942 = vrcp.f32 %v141_v3  ;;  %v1435_v11 = vld [vmem:[%s1415_s30 + $0x58] sm:$0xff]  ;;  %v1438_v12 = vld [vmem:[%s1415_s30 + $0x60] sm:$0xff]  ;;  %v1442_v14 = vld [vmem:[%s1415_s30 + $0x68] sm:$0xff]  ;;  %s1293_s4 = smov [#allocation5]  }
  0x3d   : > { %944 = vrcp.f32 %v142_v4  ;;  %v1446_v17 = vld [vmem:[%s1415_s30 + $0x70] sm:$0xff]  ;;  %v1450_v20 = vld [vmem:[%s1415_s30 + $0x78] sm:$0xff]  ;;  %v1454_v24 = vld [vmem:[%s1415_s30 + $0x80] sm:$0xff]  ;;  %p1224_p11 = pnand %p1223_p6, %p2207_p10  ;;  %s1226_s5 = sshll.u32 %s1293_s4, 4  ;;  %s1227_s5 = int_to_ptr.vmem [resolvable:$false] %s1226_s5 }
  0x3e   : > { %946 = vrcp.f32 %v143_v5  ;;  %v1458_v28 = vld [vmem:[%s1415_s30 + $0x88] sm:$0xff]  ;;  %v1467_v32 = vld [vmem:[%s1415_s30 + $0x90] sm:$0xff]  ;;  %v1472_v36 = vld [vmem:[%s1415_s30 + $0x98] sm:$0xff]  ;;  %s1228_s11 = scalar_lea.vmem %s1227_s5, 32768  ;;  %p1229_p8 = scmp.lt.s32.totalorder %s2153_s27, %s1227_s5 }
  0x3f   : > { %948 = vrcp.f32 %v144_v6  ;;  %v1477_v40 = vld [vmem:[%s1415_s30 + $0xa0] sm:$0xff]  ;;  %v1482_v44 = vld [vmem:[%s1415_s30 + $0xa8] sm:$0xff]  ;;  %v1487_v48 = vld [vmem:[%s1415_s30 + $0xb0] sm:$0xff]  ;;  %p1225_p12 = pneg %p1224_p11  ;;  %p1230_p9 = scmp.lt.s32.totalorder %s1228_s11, %s1222_s3 }
  0x40   : > { %950 = vrcp.f32 %v145_v7  ;;  %v1492_v52 = vld [vmem:[%s1415_s30 + $0xb8] sm:$0xff]  ;;  %v1498_v56 = vld [vmem:[%s1415_s30 + $0xc0] sm:$0xff]  ;;  %v1504_v60 = vld [vmem:[%s1415_s30 + $0xc8] sm:$0xff] }
  0x41   : > { %952 = vrcp.f32 %v146_v8  ;;  %p1231_p13 = por %p1230_p9, %p1229_p8 }
  0x42   : > { %954 = vrcp.f32 %v147_v9 }
  0x43   : > { %v937_v13 = vpop.eup %936  ;;  %956 = vrcp.f32 %v1432_v10  ;;  %p1232_p1 = pnand %p1231_p13, %p1225_p12 }
  0x44   : > { %v939_v15 = vpop.eup %938  ;;  %v267_v16 = vmul.f32 %v937_v13, %v138_v0  ;;  %958 = vrcp.f32 %v1435_v11  ;;  %v1510_v0 = vld [vmem:[%s1415_s30 + $0xd0] sm:$0xff] }
  0x45   : > { %v941_v18 = vpop.eup %940  ;;  %v269_v19 = vmul.f32 %v939_v15, %v139_v1  ;;  %960 = vrcp.f32 %v1438_v12 }
  0x46   : > { %v943_v21 = vpop.eup %942  ;;  %v522_v22 = vmul.f32 10000.0, %v267_v16  ;;  %v271_v23 = vmul.f32 %v941_v18, %v140_v2  ;;  %962 = vrcp.f32 %v1442_v14  ;;  %v1534_v16 = vld [vmem:[%s1415_s30 + $0xf0] sm:$0xff] }
  0x47   : > { %v945_v25 = vpop.eup %944  ;;  %v523_v26 = vmul.f32 10000.0, %v269_v19  ;;  %v273_v27 = vmul.f32 %v943_v21, %v141_v3  ;;  %964 = vrcp.f32 %v1446_v17 }
  0x48   : > { %v947_v29 = vpop.eup %946  ;;  %650 = vst [vmem:[%s1462_s17] sm:$0xff] %v522_v22  ;;  %v524_v30 = vmul.f32 10000.0, %v271_v23  ;;  %v275_v31 = vmul.f32 %v945_v25, %v142_v4  ;;  %966 = vrcp.f32 %v1450_v20  ;;  %v1516_v4 = vld [vmem:[%s1415_s30 + $0xd8] sm:$0xff] }
  0x49   : > { %v949_v33 = vpop.eup %948  ;;  %651 = vst [vmem:[%s1462_s17 + $0x8] sm:$0xff] %v523_v26  ;;  %v525_v34 = vmul.f32 10000.0, %v273_v27  ;;  %v277_v35 = vmul.f32 %v947_v29, %v143_v5  ;;  %968 = vrcp.f32 %v1454_v24 }
  0x4a   : > { %v951_v37 = vpop.eup %950  ;;  %652 = vst [vmem:[%s1462_s17 + $0x10] sm:$0xff] %v524_v30  ;;  %v526_v38 = vmul.f32 10000.0, %v275_v31  ;;  %v279_v39 = vmul.f32 %v949_v33, %v144_v6  ;;  %970 = vrcp.f32 %v1458_v28 }
  0x4b   : > { %v953_v41 = vpop.eup %952  ;;  %653 = vst [vmem:[%s1462_s17 + $0x18] sm:$0xff] %v525_v34  ;;  %v527_v42 = vmul.f32 10000.0, %v277_v35  ;;  %v281_v43 = vmul.f32 %v951_v37, %v145_v7  ;;  %972 = vrcp.f32 %v1467_v32 }
  0x4c   : > { %v955_v45 = vpop.eup %954  ;;  %654 = vst [vmem:[%s1462_s17 + $0x20] sm:$0xff] %v526_v38  ;;  %v528_v46 = vmul.f32 10000.0, %v279_v39  ;;  %v283_v47 = vmul.f32 %v953_v41, %v146_v8  ;;  %974 = vrcp.f32 %v1472_v36  ;;  %v1522_v8 = vld [vmem:[%s1415_s30 + $0xe0] sm:$0xff] }
  0x4d   : > { %v957_v49 = vpop.eup %956  ;;  %655 = vst [vmem:[%s1462_s17 + $0x28] sm:$0xff] %v527_v42  ;;  %v529_v50 = vmul.f32 10000.0, %v281_v43  ;;  %v285_v51 = vmul.f32 %v955_v45, %v147_v9  ;;  %976 = vrcp.f32 %v1477_v40 }
  0x4e   : > { %v959_v53 = vpop.eup %958  ;;  %656 = vst [vmem:[%s1462_s17 + $0x30] sm:$0xff] %v528_v46  ;;  %v530_v54 = vmul.f32 10000.0, %v283_v47  ;;  %v287_v55 = vmul.f32 %v957_v49, %v1432_v10  ;;  %978 = vrcp.f32 %v1482_v44 }
  0x4f   : > { %v961_v57 = vpop.eup %960  ;;  %657 = vst [vmem:[%s1462_s17 + $0x38] sm:$0xff] %v529_v50  ;;  %v531_v58 = vmul.f32 10000.0, %v285_v51  ;;  %v289_v59 = vmul.f32 %v959_v53, %v1435_v11  ;;  %980 = vrcp.f32 %v1487_v48 }
  0x50   : > { %v963_v61 = vpop.eup %962  ;;  %658 = vst [vmem:[%s1462_s17 + $0x40] sm:$0xff] %v530_v54  ;;  %v532_v62 = vmul.f32 10000.0, %v287_v55  ;;  %v291_v63 = vmul.f32 %v961_v57, %v1438_v12  ;;  %982 = vrcp.f32 %v1492_v52  ;;  %v1528_v12 = vld [vmem:[%s1415_s30 + $0xe8] sm:$0xff] }
  0x51   : > { %v965_v1 = vpop.eup %964  ;;  %659 = vst [vmem:[%s1462_s17 + $0x48] sm:$0xff] %v531_v58  ;;  %v533_v2 = vmul.f32 10000.0, %v289_v59  ;;  %v293_v3 = vmul.f32 %v963_v61, %v1442_v14  ;;  %984 = vrcp.f32 %v1498_v56 }
  0x52   : > { %v967_v5 = vpop.eup %966  ;;  %660 = vst [vmem:[%s1462_s17 + $0x50] sm:$0xff] %v532_v62  ;;  %v534_v6 = vmul.f32 10000.0, %v291_v63  ;;  %v295_v7 = vmul.f32 %v965_v1, %v1446_v17  ;;  %986 = vrcp.f32 %v1504_v60 }
  0x53   : > { %v969_v9 = vpop.eup %968  ;;  %661 = vst [vmem:[%s1462_s17 + $0x58] sm:$0xff] %v533_v2  ;;  %v535_v10 = vmul.f32 10000.0, %v293_v3  ;;  %v297_v11 = vmul.f32 %v967_v5, %v1450_v20  ;;  %988 = vrcp.f32 %v1510_v0  ;;  %v1540_v20 = vld [vmem:[%s1415_s30 + $0xf8] sm:$0xff] }
  0x54   : > { %v971_v13 = vpop.eup %970  ;;  %662 = vst [vmem:[%s1462_s17 + $0x60] sm:$0xff] %v534_v6  ;;  %v536_v14 = vmul.f32 10000.0, %v295_v7  ;;  %v299_v15 = vmul.f32 %v969_v9, %v1454_v24  ;;  %990 = vrcp.f32 %v1516_v4  ;;  %v1546_v24 = vld [vmem:[%s1415_s30 + $0x100] sm:$0xff] }
  0x55   : > { %v973_v17 = vpop.eup %972  ;;  %663 = vst [vmem:[%s1462_s17 + $0x68] sm:$0xff] %v535_v10  ;;  %v537_v18 = vmul.f32 10000.0, %v297_v11  ;;  %v301_v19 = vmul.f32 %v971_v13, %v1458_v28  ;;  %992 = vrcp.f32 %v1522_v8  ;;  %v1552_v28 = vld [vmem:[%s1415_s30 + $0x108] sm:$0xff] }
  0x56   : > { %v975_v21 = vpop.eup %974  ;;  %664 = vst [vmem:[%s1462_s17 + $0x70] sm:$0xff] %v536_v14  ;;  %v538_v22 = vmul.f32 10000.0, %v299_v15  ;;  %v303_v23 = vmul.f32 %v973_v17, %v1467_v32  ;;  %994 = vrcp.f32 %v1528_v12  ;;  %v1558_v32 = vld [vmem:[%s1415_s30 + $0x110] sm:$0xff] }
  0x57   : > { %v977_v25 = vpop.eup %976  ;;  %665 = vst [vmem:[%s1462_s17 + $0x78] sm:$0xff] %v537_v18  ;;  %v539_v26 = vmul.f32 10000.0, %v301_v19  ;;  %v305_v27 = vmul.f32 %v975_v21, %v1472_v36  ;;  %996 = vrcp.f32 %v1534_v16  ;;  %v1564_v36 = vld [vmem:[%s1415_s30 + $0x118] sm:$0xff] }
  0x58   : > { %v979_v29 = vpop.eup %978  ;;  %666 = vst [vmem:[%s1462_s17 + $0x80] sm:$0xff] %v538_v22  ;;  %v540_v30 = vmul.f32 10000.0, %v303_v23  ;;  %v307_v31 = vmul.f32 %v977_v25, %v1477_v40  ;;  %998 = vrcp.f32 %v1540_v20  ;;  %v1570_v40 = vld [vmem:[%s1415_s30 + $0x120] sm:$0xff] }
  0x59   : > { %v981_v33 = vpop.eup %980  ;;  %667 = vst [vmem:[%s1462_s17 + $0x88] sm:$0xff] %v539_v26  ;;  %v541_v34 = vmul.f32 10000.0, %v305_v27  ;;  %v309_v35 = vmul.f32 %v979_v29, %v1482_v44  ;;  %1000 = vrcp.f32 %v1546_v24  ;;  %v1576_v44 = vld [vmem:[%s1415_s30 + $0x128] sm:$0xff] }
  0x5a   : > { %v983_v37 = vpop.eup %982  ;;  %668 = vst [vmem:[%s1462_s17 + $0x90] sm:$0xff] %v540_v30  ;;  %v542_v38 = vmul.f32 10000.0, %v307_v31  ;;  %v311_v39 = vmul.f32 %v981_v33, %v1487_v48  ;;  %1002 = vrcp.f32 %v1552_v28  ;;  %v1582_v48 = vld [vmem:[%s1415_s30 + $0x130] sm:$0xff] }
  0x5b   : > { %v985_v41 = vpop.eup %984  ;;  %669 = vst [vmem:[%s1462_s17 + $0x98] sm:$0xff] %v541_v34  ;;  %v543_v42 = vmul.f32 10000.0, %v309_v35  ;;  %v313_v43 = vmul.f32 %v983_v37, %v1492_v52  ;;  %1004 = vrcp.f32 %v1558_v32  ;;  %v1588_v52 = vld [vmem:[%s1415_s30 + $0x138] sm:$0xff] }
  0x5c   : > { %v987_v45 = vpop.eup %986  ;;  %670 = vst [vmem:[%s1462_s17 + $0xa0] sm:$0xff] %v542_v38  ;;  %v544_v46 = vmul.f32 10000.0, %v311_v39  ;;  %v315_v47 = vmul.f32 %v985_v41, %v1498_v56  ;;  %1006 = vrcp.f32 %v1564_v36  ;;  %v1594_v56 = vld [vmem:[%s1415_s30 + $0x140] sm:$0xff] }
  0x5d   : > { %v989_v49 = vpop.eup %988  ;;  %671 = vst [vmem:[%s1462_s17 + $0xa8] sm:$0xff] %v543_v42  ;;  %v545_v50 = vmul.f32 10000.0, %v313_v43  ;;  %v317_v51 = vmul.f32 %v987_v45, %v1504_v60  ;;  %1008 = vrcp.f32 %v1570_v40  ;;  %v1600_v60 = vld [vmem:[%s1415_s30 + $0x148] sm:$0xff] }
  0x5e   : > { %v991_v53 = vpop.eup %990  ;;  %672 = vst [vmem:[%s1462_s17 + $0xb0] sm:$0xff] %v544_v46  ;;  %v546_v54 = vmul.f32 10000.0, %v315_v47  ;;  %v319_v55 = vmul.f32 %v989_v49, %v1510_v0  ;;  %1010 = vrcp.f32 %v1576_v44  ;;  %v1606_v0 = vld [vmem:[%s1415_s30 + $0x150] sm:$0xff] }
  0x5f   : > { %v993_v57 = vpop.eup %992  ;;  %673 = vst [vmem:[%s1462_s17 + $0xb8] sm:$0xff] %v545_v50  ;;  %v547_v58 = vmul.f32 10000.0, %v317_v51  ;;  %v321_v59 = vmul.f32 %v991_v53, %v1516_v4  ;;  %1012 = vrcp.f32 %v1582_v48  ;;  %v1612_v4 = vld [vmem:[%s1415_s30 + $0x158] sm:$0xff] }
  0x60   : > { %v995_v61 = vpop.eup %994  ;;  %674 = vst [vmem:[%s1462_s17 + $0xc0] sm:$0xff] %v546_v54  ;;  %v548_v62 = vmul.f32 10000.0, %v319_v55  ;;  %v323_v63 = vmul.f32 %v993_v57, %v1522_v8  ;;  %1014 = vrcp.f32 %v1588_v52  ;;  %v1618_v8 = vld [vmem:[%s1415_s30 + $0x160] sm:$0xff] }
  0x61   : > { %v997_v1 = vpop.eup %996  ;;  %675 = vst [vmem:[%s1462_s17 + $0xc8] sm:$0xff] %v547_v58  ;;  %v549_v2 = vmul.f32 10000.0, %v321_v59  ;;  %v325_v3 = vmul.f32 %v995_v61, %v1528_v12  ;;  %1016 = vrcp.f32 %v1594_v56  ;;  %v1624_v12 = vld [vmem:[%s1415_s30 + $0x168] sm:$0xff] }
  0x62   : > { %v999_v5 = vpop.eup %998  ;;  %676 = vst [vmem:[%s1462_s17 + $0xd0] sm:$0xff] %v548_v62  ;;  %v550_v6 = vmul.f32 10000.0, %v323_v63  ;;  %v327_v7 = vmul.f32 %v997_v1, %v1534_v16  ;;  %1018 = vrcp.f32 %v1600_v60  ;;  %v1630_v16 = vld [vmem:[%s1415_s30 + $0x170] sm:$0xff] }
  0x63   : > { %v1001_v9 = vpop.eup %1000  ;;  %677 = vst [vmem:[%s1462_s17 + $0xd8] sm:$0xff] %v549_v2  ;;  %v551_v10 = vmul.f32 10000.0, %v325_v3  ;;  %v329_v11 = vmul.f32 %v999_v5, %v1540_v20  ;;  %1020 = vrcp.f32 %v1606_v0  ;;  %v1636_v20 = vld [vmem:[%s1415_s30 + $0x178] sm:$0xff] }
  0x64   : > { %v1003_v13 = vpop.eup %1002  ;;  %678 = vst [vmem:[%s1462_s17 + $0xe0] sm:$0xff] %v550_v6  ;;  %v552_v14 = vmul.f32 10000.0, %v327_v7  ;;  %v331_v15 = vmul.f32 %v1001_v9, %v1546_v24  ;;  %1022 = vrcp.f32 %v1612_v4  ;;  %v1642_v24 = vld [vmem:[%s1415_s30 + $0x180] sm:$0xff] }
  0x65   : > { %v1005_v17 = vpop.eup %1004  ;;  %679 = vst [vmem:[%s1462_s17 + $0xe8] sm:$0xff] %v551_v10  ;;  %v553_v18 = vmul.f32 10000.0, %v329_v11  ;;  %v333_v19 = vmul.f32 %v1003_v13, %v1552_v28  ;;  %1024 = vrcp.f32 %v1618_v8  ;;  %v1648_v28 = vld [vmem:[%s1415_s30 + $0x188] sm:$0xff] }
  0x66   : > { %v1007_v21 = vpop.eup %1006  ;;  %680 = vst [vmem:[%s1462_s17 + $0xf0] sm:$0xff] %v552_v14  ;;  %v554_v22 = vmul.f32 10000.0, %v331_v15  ;;  %v335_v23 = vmul.f32 %v1005_v17, %v1558_v32  ;;  %1026 = vrcp.f32 %v1624_v12  ;;  %v1654_v32 = vld [vmem:[%s1415_s30 + $0x190] sm:$0xff] }
  0x67   : > { %v1009_v25 = vpop.eup %1008  ;;  %681 = vst [vmem:[%s1462_s17 + $0xf8] sm:$0xff] %v553_v18  ;;  %v555_v26 = vmul.f32 10000.0, %v333_v19  ;;  %v337_v27 = vmul.f32 %v1007_v21, %v1564_v36  ;;  %1028 = vrcp.f32 %v1630_v16  ;;  %v1660_v36 = vld [vmem:[%s1415_s30 + $0x198] sm:$0xff] }
  0x68   : > { %v1011_v29 = vpop.eup %1010  ;;  %682 = vst [vmem:[%s1462_s17 + $0x100] sm:$0xff] %v554_v22  ;;  %v556_v30 = vmul.f32 10000.0, %v335_v23  ;;  %v339_v31 = vmul.f32 %v1009_v25, %v1570_v40  ;;  %1030 = vrcp.f32 %v1636_v20  ;;  %v1666_v40 = vld [vmem:[%s1415_s30 + $0x1a0] sm:$0xff] }
  0x69   : > { %v1013_v33 = vpop.eup %1012  ;;  %683 = vst [vmem:[%s1462_s17 + $0x108] sm:$0xff] %v555_v26  ;;  %v557_v34 = vmul.f32 10000.0, %v337_v27  ;;  %v341_v35 = vmul.f32 %v1011_v29, %v1576_v44  ;;  %1032 = vrcp.f32 %v1642_v24  ;;  %v1672_v44 = vld [vmem:[%s1415_s30 + $0x1a8] sm:$0xff] }
  0x6a   : > { %v1015_v37 = vpop.eup %1014  ;;  %684 = vst [vmem:[%s1462_s17 + $0x110] sm:$0xff] %v556_v30  ;;  %v558_v38 = vmul.f32 10000.0, %v339_v31  ;;  %v343_v39 = vmul.f32 %v1013_v33, %v1582_v48  ;;  %1034 = vrcp.f32 %v1648_v28  ;;  %v1678_v48 = vld [vmem:[%s1415_s30 + $0x1b0] sm:$0xff] }
  0x6b   : > { %v1017_v41 = vpop.eup %1016  ;;  %685 = vst [vmem:[%s1462_s17 + $0x118] sm:$0xff] %v557_v34  ;;  %v559_v42 = vmul.f32 10000.0, %v341_v35  ;;  %v345_v43 = vmul.f32 %v1015_v37, %v1588_v52  ;;  %1036 = vrcp.f32 %v1654_v32  ;;  %v1684_v52 = vld [vmem:[%s1415_s30 + $0x1b8] sm:$0xff] }
  0x6c   : > { %v1019_v45 = vpop.eup %1018  ;;  %686 = vst [vmem:[%s1462_s17 + $0x120] sm:$0xff] %v558_v38  ;;  %v560_v46 = vmul.f32 10000.0, %v343_v39  ;;  %v347_v47 = vmul.f32 %v1017_v41, %v1594_v56  ;;  %1038 = vrcp.f32 %v1660_v36  ;;  %v1690_v56 = vld [vmem:[%s1415_s30 + $0x1c0] sm:$0xff] }
  0x6d   : > { %v1021_v49 = vpop.eup %1020  ;;  %687 = vst [vmem:[%s1462_s17 + $0x128] sm:$0xff] %v559_v42  ;;  %v561_v50 = vmul.f32 10000.0, %v345_v43  ;;  %v349_v51 = vmul.f32 %v1019_v45, %v1600_v60  ;;  %1040 = vrcp.f32 %v1666_v40  ;;  %v1696_v60 = vld [vmem:[%s1415_s30 + $0x1c8] sm:$0xff] }
  0x6e   : > { %v1023_v53 = vpop.eup %1022  ;;  %688 = vst [vmem:[%s1462_s17 + $0x130] sm:$0xff] %v560_v46  ;;  %v562_v54 = vmul.f32 10000.0, %v347_v47  ;;  %v351_v55 = vmul.f32 %v1021_v49, %v1606_v0  ;;  %1042 = vrcp.f32 %v1672_v44  ;;  %v1702_v0 = vld [vmem:[%s1415_s30 + $0x1d0] sm:$0xff] }
  0x6f   : > { %v1025_v57 = vpop.eup %1024  ;;  %689 = vst [vmem:[%s1462_s17 + $0x138] sm:$0xff] %v561_v50  ;;  %v563_v58 = vmul.f32 10000.0, %v349_v51  ;;  %v353_v59 = vmul.f32 %v1023_v53, %v1612_v4  ;;  %1044 = vrcp.f32 %v1678_v48  ;;  %v1708_v4 = vld [vmem:[%s1415_s30 + $0x1d8] sm:$0xff] }
  0x70   : > { %v1027_v61 = vpop.eup %1026  ;;  %690 = vst [vmem:[%s1462_s17 + $0x140] sm:$0xff] %v562_v54  ;;  %v564_v62 = vmul.f32 10000.0, %v351_v55  ;;  %v355_v63 = vmul.f32 %v1025_v57, %v1618_v8  ;;  %1046 = vrcp.f32 %v1684_v52  ;;  %v1714_v8 = vld [vmem:[%s1415_s30 + $0x1e0] sm:$0xff] }
  0x71   : > { %v1029_v1 = vpop.eup %1028  ;;  %691 = vst [vmem:[%s1462_s17 + $0x148] sm:$0xff] %v563_v58  ;;  %v565_v2 = vmul.f32 10000.0, %v353_v59  ;;  %v357_v3 = vmul.f32 %v1027_v61, %v1624_v12  ;;  %1048 = vrcp.f32 %v1690_v56  ;;  %v1720_v12 = vld [vmem:[%s1415_s30 + $0x1e8] sm:$0xff] }
  0x72   : > { %v1031_v5 = vpop.eup %1030  ;;  %692 = vst [vmem:[%s1462_s17 + $0x150] sm:$0xff] %v564_v62  ;;  %v566_v6 = vmul.f32 10000.0, %v355_v63  ;;  %v359_v7 = vmul.f32 %v1029_v1, %v1630_v16  ;;  %1050 = vrcp.f32 %v1696_v60  ;;  %v1726_v16 = vld [vmem:[%s1415_s30 + $0x1f0] sm:$0xff] }
  0x73   : > { %v1033_v9 = vpop.eup %1032  ;;  %693 = vst [vmem:[%s1462_s17 + $0x158] sm:$0xff] %v565_v2  ;;  %v567_v10 = vmul.f32 10000.0, %v357_v3  ;;  %v361_v11 = vmul.f32 %v1031_v5, %v1636_v20  ;;  %1052 = vrcp.f32 %v1702_v0  ;;  %v1732_v20 = vld [vmem:[%s1415_s30 + $0x1f8] sm:$0xff] }
  0x74   : > { %v1035_v13 = vpop.eup %1034  ;;  %694 = vst [vmem:[%s1462_s17 + $0x160] sm:$0xff] %v566_v6  ;;  %v568_v14 = vmul.f32 10000.0, %v359_v7  ;;  %v363_v15 = vmul.f32 %v1033_v9, %v1642_v24  ;;  %1054 = vrcp.f32 %v1708_v4  ;;  %v1738_v24 = vld [vmem:[%s1415_s30 + $0x200] sm:$0xff] }
  0x75   : > { %v1037_v17 = vpop.eup %1036  ;;  %695 = vst [vmem:[%s1462_s17 + $0x168] sm:$0xff] %v567_v10  ;;  %v569_v18 = vmul.f32 10000.0, %v361_v11  ;;  %v365_v19 = vmul.f32 %v1035_v13, %v1648_v28  ;;  %1056 = vrcp.f32 %v1714_v8  ;;  %v1744_v28 = vld [vmem:[%s1415_s30 + $0x208] sm:$0xff] }
  0x76   : > { %v1039_v21 = vpop.eup %1038  ;;  %696 = vst [vmem:[%s1462_s17 + $0x170] sm:$0xff] %v568_v14  ;;  %v570_v22 = vmul.f32 10000.0, %v363_v15  ;;  %v367_v23 = vmul.f32 %v1037_v17, %v1654_v32  ;;  %1058 = vrcp.f32 %v1720_v12  ;;  %v1750_v32 = vld [vmem:[%s1415_s30 + $0x210] sm:$0xff] }
  0x77   : > { %v1041_v25 = vpop.eup %1040  ;;  %697 = vst [vmem:[%s1462_s17 + $0x178] sm:$0xff] %v569_v18  ;;  %v571_v26 = vmul.f32 10000.0, %v365_v19  ;;  %v369_v27 = vmul.f32 %v1039_v21, %v1660_v36  ;;  %1060 = vrcp.f32 %v1726_v16  ;;  %v1756_v36 = vld [vmem:[%s1415_s30 + $0x218] sm:$0xff] }
  0x78   : > { %v1043_v29 = vpop.eup %1042  ;;  %698 = vst [vmem:[%s1462_s17 + $0x180] sm:$0xff] %v570_v22  ;;  %v572_v30 = vmul.f32 10000.0, %v367_v23  ;;  %v371_v31 = vmul.f32 %v1041_v25, %v1666_v40  ;;  %1062 = vrcp.f32 %v1732_v20  ;;  %v1762_v40 = vld [vmem:[%s1415_s30 + $0x220] sm:$0xff] }
  0x79   : > { %v1045_v33 = vpop.eup %1044  ;;  %699 = vst [vmem:[%s1462_s17 + $0x188] sm:$0xff] %v571_v26  ;;  %v573_v34 = vmul.f32 10000.0, %v369_v27  ;;  %v373_v35 = vmul.f32 %v1043_v29, %v1672_v44  ;;  %1064 = vrcp.f32 %v1738_v24  ;;  %v1768_v44 = vld [vmem:[%s1415_s30 + $0x228] sm:$0xff] }
  0x7a   : > { %v1047_v37 = vpop.eup %1046  ;;  %700 = vst [vmem:[%s1462_s17 + $0x190] sm:$0xff] %v572_v30  ;;  %v574_v38 = vmul.f32 10000.0, %v371_v31  ;;  %v375_v39 = vmul.f32 %v1045_v33, %v1678_v48  ;;  %1066 = vrcp.f32 %v1744_v28  ;;  %v1774_v48 = vld [vmem:[%s1415_s30 + $0x230] sm:$0xff] }
  0x7b   : > { %v1049_v41 = vpop.eup %1048  ;;  %701 = vst [vmem:[%s1462_s17 + $0x198] sm:$0xff] %v573_v34  ;;  %v575_v42 = vmul.f32 10000.0, %v373_v35  ;;  %v377_v43 = vmul.f32 %v1047_v37, %v1684_v52  ;;  %1068 = vrcp.f32 %v1750_v32  ;;  %v1780_v52 = vld [vmem:[%s1415_s30 + $0x238] sm:$0xff] }
  0x7c   : > { %v1051_v45 = vpop.eup %1050  ;;  %702 = vst [vmem:[%s1462_s17 + $0x1a0] sm:$0xff] %v574_v38  ;;  %v576_v46 = vmul.f32 10000.0, %v375_v39  ;;  %v379_v47 = vmul.f32 %v1049_v41, %v1690_v56  ;;  %1070 = vrcp.f32 %v1756_v36  ;;  %v1786_v56 = vld [vmem:[%s1415_s30 + $0x240] sm:$0xff] }
  0x7d   : > { %v1053_v49 = vpop.eup %1052  ;;  %703 = vst [vmem:[%s1462_s17 + $0x1a8] sm:$0xff] %v575_v42  ;;  %v577_v50 = vmul.f32 10000.0, %v377_v43  ;;  %v381_v51 = vmul.f32 %v1051_v45, %v1696_v60  ;;  %1072 = vrcp.f32 %v1762_v40  ;;  %v1792_v60 = vld [vmem:[%s1415_s30 + $0x248] sm:$0xff] }
  0x7e   : > { %v1055_v53 = vpop.eup %1054  ;;  %704 = vst [vmem:[%s1462_s17 + $0x1b0] sm:$0xff] %v576_v46  ;;  %v578_v54 = vmul.f32 10000.0, %v379_v47  ;;  %v383_v55 = vmul.f32 %v1053_v49, %v1702_v0  ;;  %1074 = vrcp.f32 %v1768_v44  ;;  %v1798_v0 = vld [vmem:[%s1415_s30 + $0x250] sm:$0xff] }
  0x7f   : > { %v1057_v57 = vpop.eup %1056  ;;  %705 = vst [vmem:[%s1462_s17 + $0x1b8] sm:$0xff] %v577_v50  ;;  %v579_v58 = vmul.f32 10000.0, %v381_v51  ;;  %v385_v59 = vmul.f32 %v1055_v53, %v1708_v4  ;;  %1076 = vrcp.f32 %v1774_v48  ;;  %v1804_v4 = vld [vmem:[%s1415_s30 + $0x258] sm:$0xff] }
  0x80   : > { %v1059_v61 = vpop.eup %1058  ;;  %706 = vst [vmem:[%s1462_s17 + $0x1c0] sm:$0xff] %v578_v54  ;;  %v580_v62 = vmul.f32 10000.0, %v383_v55  ;;  %v387_v63 = vmul.f32 %v1057_v57, %v1714_v8  ;;  %1078 = vrcp.f32 %v1780_v52  ;;  %v1810_v8 = vld [vmem:[%s1415_s30 + $0x260] sm:$0xff] }
  0x81   : > { %v1061_v1 = vpop.eup %1060  ;;  %707 = vst [vmem:[%s1462_s17 + $0x1c8] sm:$0xff] %v579_v58  ;;  %v581_v2 = vmul.f32 10000.0, %v385_v59  ;;  %v389_v3 = vmul.f32 %v1059_v61, %v1720_v12  ;;  %1080 = vrcp.f32 %v1786_v56  ;;  %v1816_v12 = vld [vmem:[%s1415_s30 + $0x268] sm:$0xff] }
  0x82   : > { %v1063_v5 = vpop.eup %1062  ;;  %708 = vst [vmem:[%s1462_s17 + $0x1d0] sm:$0xff] %v580_v62  ;;  %v582_v6 = vmul.f32 10000.0, %v387_v63  ;;  %v391_v7 = vmul.f32 %v1061_v1, %v1726_v16  ;;  %1082 = vrcp.f32 %v1792_v60  ;;  %v1822_v16 = vld [vmem:[%s1415_s30 + $0x270] sm:$0xff] }
  0x83   : > { %v1065_v9 = vpop.eup %1064  ;;  %709 = vst [vmem:[%s1462_s17 + $0x1d8] sm:$0xff] %v581_v2  ;;  %v583_v10 = vmul.f32 10000.0, %v389_v3  ;;  %v393_v11 = vmul.f32 %v1063_v5, %v1732_v20  ;;  %1084 = vrcp.f32 %v1798_v0  ;;  %v1828_v20 = vld [vmem:[%s1415_s30 + $0x278] sm:$0xff] }
  0x84   : > { %v1067_v13 = vpop.eup %1066  ;;  %710 = vst [vmem:[%s1462_s17 + $0x1e0] sm:$0xff] %v582_v6  ;;  %v584_v14 = vmul.f32 10000.0, %v391_v7  ;;  %v395_v15 = vmul.f32 %v1065_v9, %v1738_v24  ;;  %1086 = vrcp.f32 %v1804_v4  ;;  %v1834_v24 = vld [vmem:[%s1415_s30 + $0x280] sm:$0xff] }
  0x85   : > { %v1069_v17 = vpop.eup %1068  ;;  %711 = vst [vmem:[%s1462_s17 + $0x1e8] sm:$0xff] %v583_v10  ;;  %v585_v18 = vmul.f32 10000.0, %v393_v11  ;;  %v397_v19 = vmul.f32 %v1067_v13, %v1744_v28  ;;  %1088 = vrcp.f32 %v1810_v8  ;;  %v1840_v28 = vld [vmem:[%s1415_s30 + $0x288] sm:$0xff] }
  0x86   : > { %v1071_v21 = vpop.eup %1070  ;;  %712 = vst [vmem:[%s1462_s17 + $0x1f0] sm:$0xff] %v584_v14  ;;  %v586_v22 = vmul.f32 10000.0, %v395_v15  ;;  %v399_v23 = vmul.f32 %v1069_v17, %v1750_v32  ;;  %1090 = vrcp.f32 %v1816_v12  ;;  %v1846_v32 = vld [vmem:[%s1415_s30 + $0x290] sm:$0xff] }
  0x87   : > { %v1073_v25 = vpop.eup %1072  ;;  %713 = vst [vmem:[%s1462_s17 + $0x1f8] sm:$0xff] %v585_v18  ;;  %v587_v26 = vmul.f32 10000.0, %v397_v19  ;;  %v401_v27 = vmul.f32 %v1071_v21, %v1756_v36  ;;  %1092 = vrcp.f32 %v1822_v16  ;;  %v1852_v36 = vld [vmem:[%s1415_s30 + $0x298] sm:$0xff] }
  0x88   : > { %v1075_v29 = vpop.eup %1074  ;;  %714 = vst [vmem:[%s1462_s17 + $0x200] sm:$0xff] %v586_v22  ;;  %v588_v30 = vmul.f32 10000.0, %v399_v23  ;;  %v403_v31 = vmul.f32 %v1073_v25, %v1762_v40  ;;  %1094 = vrcp.f32 %v1828_v20  ;;  %v1858_v40 = vld [vmem:[%s1415_s30 + $0x2a0] sm:$0xff] }
  0x89   : > { %v1077_v33 = vpop.eup %1076  ;;  %715 = vst [vmem:[%s1462_s17 + $0x208] sm:$0xff] %v587_v26  ;;  %v589_v34 = vmul.f32 10000.0, %v401_v27  ;;  %v405_v35 = vmul.f32 %v1075_v29, %v1768_v44  ;;  %1096 = vrcp.f32 %v1834_v24  ;;  %v1864_v44 = vld [vmem:[%s1415_s30 + $0x2a8] sm:$0xff] }
  0x8a   : > { %v1079_v37 = vpop.eup %1078  ;;  %716 = vst [vmem:[%s1462_s17 + $0x210] sm:$0xff] %v588_v30  ;;  %v590_v38 = vmul.f32 10000.0, %v403_v31  ;;  %v407_v39 = vmul.f32 %v1077_v33, %v1774_v48  ;;  %1098 = vrcp.f32 %v1840_v28  ;;  %v1870_v48 = vld [vmem:[%s1415_s30 + $0x2b0] sm:$0xff] }
  0x8b   : > { %v1081_v41 = vpop.eup %1080  ;;  %717 = vst [vmem:[%s1462_s17 + $0x218] sm:$0xff] %v589_v34  ;;  %v591_v42 = vmul.f32 10000.0, %v405_v35  ;;  %v409_v43 = vmul.f32 %v1079_v37, %v1780_v52  ;;  %1100 = vrcp.f32 %v1846_v32  ;;  %v1876_v52 = vld [vmem:[%s1415_s30 + $0x2b8] sm:$0xff] }
  0x8c   : > { %v1083_v45 = vpop.eup %1082  ;;  %718 = vst [vmem:[%s1462_s17 + $0x220] sm:$0xff] %v590_v38  ;;  %v592_v46 = vmul.f32 10000.0, %v407_v39  ;;  %v411_v47 = vmul.f32 %v1081_v41, %v1786_v56  ;;  %1102 = vrcp.f32 %v1852_v36  ;;  %v1882_v56 = vld [vmem:[%s1415_s30 + $0x2c0] sm:$0xff] }
  0x8d   : > { %v1085_v49 = vpop.eup %1084  ;;  %719 = vst [vmem:[%s1462_s17 + $0x228] sm:$0xff] %v591_v42  ;;  %v593_v50 = vmul.f32 10000.0, %v409_v43  ;;  %v413_v51 = vmul.f32 %v1083_v45, %v1792_v60  ;;  %1104 = vrcp.f32 %v1858_v40  ;;  %v1888_v60 = vld [vmem:[%s1415_s30 + $0x2c8] sm:$0xff] }
  0x8e   : > { %v1087_v53 = vpop.eup %1086  ;;  %720 = vst [vmem:[%s1462_s17 + $0x230] sm:$0xff] %v592_v46  ;;  %v594_v54 = vmul.f32 10000.0, %v411_v47  ;;  %v415_v55 = vmul.f32 %v1085_v49, %v1798_v0  ;;  %1106 = vrcp.f32 %v1864_v44  ;;  %v1894_v0 = vld [vmem:[%s1415_s30 + $0x2d0] sm:$0xff] }
  0x8f   : > { %v1089_v57 = vpop.eup %1088  ;;  %721 = vst [vmem:[%s1462_s17 + $0x238] sm:$0xff] %v593_v50  ;;  %v595_v58 = vmul.f32 10000.0, %v413_v51  ;;  %v417_v59 = vmul.f32 %v1087_v53, %v1804_v4  ;;  %1108 = vrcp.f32 %v1870_v48  ;;  %v1900_v4 = vld [vmem:[%s1415_s30 + $0x2d8] sm:$0xff] }
  0x90   : > { %v1091_v61 = vpop.eup %1090  ;;  %722 = vst [vmem:[%s1462_s17 + $0x240] sm:$0xff] %v594_v54  ;;  %v596_v62 = vmul.f32 10000.0, %v415_v55  ;;  %v419_v63 = vmul.f32 %v1089_v57, %v1810_v8  ;;  %1110 = vrcp.f32 %v1876_v52  ;;  %v1906_v8 = vld [vmem:[%s1415_s30 + $0x2e0] sm:$0xff] }
  0x91   : > { %v1093_v1 = vpop.eup %1092  ;;  %723 = vst [vmem:[%s1462_s17 + $0x248] sm:$0xff] %v595_v58  ;;  %v597_v2 = vmul.f32 10000.0, %v417_v59  ;;  %v421_v3 = vmul.f32 %v1091_v61, %v1816_v12  ;;  %1112 = vrcp.f32 %v1882_v56  ;;  %v1912_v12 = vld [vmem:[%s1415_s30 + $0x2e8] sm:$0xff] }
  0x92   : > { %v1095_v5 = vpop.eup %1094  ;;  %724 = vst [vmem:[%s1462_s17 + $0x250] sm:$0xff] %v596_v62  ;;  %v598_v6 = vmul.f32 10000.0, %v419_v63  ;;  %v423_v7 = vmul.f32 %v1093_v1, %v1822_v16  ;;  %1114 = vrcp.f32 %v1888_v60  ;;  %v1918_v16 = vld [vmem:[%s1415_s30 + $0x2f0] sm:$0xff] }
  0x93   : > { %v1097_v9 = vpop.eup %1096  ;;  %725 = vst [vmem:[%s1462_s17 + $0x258] sm:$0xff] %v597_v2  ;;  %v599_v10 = vmul.f32 10000.0, %v421_v3  ;;  %v425_v11 = vmul.f32 %v1095_v5, %v1828_v20  ;;  %1116 = vrcp.f32 %v1894_v0  ;;  %v1924_v20 = vld [vmem:[%s1415_s30 + $0x2f8] sm:$0xff] }
  0x94   : > { %v1099_v13 = vpop.eup %1098  ;;  %726 = vst [vmem:[%s1462_s17 + $0x260] sm:$0xff] %v598_v6  ;;  %v600_v14 = vmul.f32 10000.0, %v423_v7  ;;  %v427_v15 = vmul.f32 %v1097_v9, %v1834_v24  ;;  %1118 = vrcp.f32 %v1900_v4  ;;  %v1930_v24 = vld [vmem:[%s1415_s30 + $0x300] sm:$0xff] }
  0x95   : > { %v1101_v17 = vpop.eup %1100  ;;  %727 = vst [vmem:[%s1462_s17 + $0x268] sm:$0xff] %v599_v10  ;;  %v601_v18 = vmul.f32 10000.0, %v425_v11  ;;  %v429_v19 = vmul.f32 %v1099_v13, %v1840_v28  ;;  %1120 = vrcp.f32 %v1906_v8  ;;  %v1936_v28 = vld [vmem:[%s1415_s30 + $0x308] sm:$0xff] }
  0x96   : > { %v1103_v21 = vpop.eup %1102  ;;  %728 = vst [vmem:[%s1462_s17 + $0x270] sm:$0xff] %v600_v14  ;;  %v602_v22 = vmul.f32 10000.0, %v427_v15  ;;  %v431_v23 = vmul.f32 %v1101_v17, %v1846_v32  ;;  %1122 = vrcp.f32 %v1912_v12  ;;  %v1942_v32 = vld [vmem:[%s1415_s30 + $0x310] sm:$0xff] }
  0x97   : > { %v1105_v25 = vpop.eup %1104  ;;  %729 = vst [vmem:[%s1462_s17 + $0x278] sm:$0xff] %v601_v18  ;;  %v603_v26 = vmul.f32 10000.0, %v429_v19  ;;  %v433_v27 = vmul.f32 %v1103_v21, %v1852_v36  ;;  %1124 = vrcp.f32 %v1918_v16  ;;  %v1948_v36 = vld [vmem:[%s1415_s30 + $0x318] sm:$0xff] }
  0x98   : > { %v1107_v29 = vpop.eup %1106  ;;  %730 = vst [vmem:[%s1462_s17 + $0x280] sm:$0xff] %v602_v22  ;;  %v604_v30 = vmul.f32 10000.0, %v431_v23  ;;  %v435_v31 = vmul.f32 %v1105_v25, %v1858_v40  ;;  %1126 = vrcp.f32 %v1924_v20  ;;  %v1954_v40 = vld [vmem:[%s1415_s30 + $0x320] sm:$0xff] }
  0x99   : > { %v1109_v33 = vpop.eup %1108  ;;  %731 = vst [vmem:[%s1462_s17 + $0x288] sm:$0xff] %v603_v26  ;;  %v605_v34 = vmul.f32 10000.0, %v433_v27  ;;  %v437_v35 = vmul.f32 %v1107_v29, %v1864_v44  ;;  %1128 = vrcp.f32 %v1930_v24  ;;  %v1960_v44 = vld [vmem:[%s1415_s30 + $0x328] sm:$0xff] }
  0x9a   : > { %v1111_v37 = vpop.eup %1110  ;;  %732 = vst [vmem:[%s1462_s17 + $0x290] sm:$0xff] %v604_v30  ;;  %v606_v38 = vmul.f32 10000.0, %v435_v31  ;;  %v439_v39 = vmul.f32 %v1109_v33, %v1870_v48  ;;  %1130 = vrcp.f32 %v1936_v28  ;;  %v1966_v48 = vld [vmem:[%s1415_s30 + $0x330] sm:$0xff] }
  0x9b   : > { %v1113_v41 = vpop.eup %1112  ;;  %733 = vst [vmem:[%s1462_s17 + $0x298] sm:$0xff] %v605_v34  ;;  %v607_v42 = vmul.f32 10000.0, %v437_v35  ;;  %v441_v43 = vmul.f32 %v1111_v37, %v1876_v52  ;;  %1132 = vrcp.f32 %v1942_v32  ;;  %v1972_v52 = vld [vmem:[%s1415_s30 + $0x338] sm:$0xff] }
  0x9c   : > { %v1115_v45 = vpop.eup %1114  ;;  %734 = vst [vmem:[%s1462_s17 + $0x2a0] sm:$0xff] %v606_v38  ;;  %v608_v46 = vmul.f32 10000.0, %v439_v39  ;;  %v443_v47 = vmul.f32 %v1113_v41, %v1882_v56  ;;  %1134 = vrcp.f32 %v1948_v36  ;;  %v1978_v56 = vld [vmem:[%s1415_s30 + $0x340] sm:$0xff] }
  0x9d   : > { %v1117_v49 = vpop.eup %1116  ;;  %735 = vst [vmem:[%s1462_s17 + $0x2a8] sm:$0xff] %v607_v42  ;;  %v609_v50 = vmul.f32 10000.0, %v441_v43  ;;  %v445_v51 = vmul.f32 %v1115_v45, %v1888_v60  ;;  %1136 = vrcp.f32 %v1954_v40  ;;  %v1984_v60 = vld [vmem:[%s1415_s30 + $0x348] sm:$0xff] }
  0x9e   : > { %v1119_v53 = vpop.eup %1118  ;;  %736 = vst [vmem:[%s1462_s17 + $0x2b0] sm:$0xff] %v608_v46  ;;  %v610_v54 = vmul.f32 10000.0, %v443_v47  ;;  %v447_v55 = vmul.f32 %v1117_v49, %v1894_v0  ;;  %1138 = vrcp.f32 %v1960_v44  ;;  %v1990_v0 = vld [vmem:[%s1415_s30 + $0x350] sm:$0xff] }
  0x9f   : > { %v1121_v57 = vpop.eup %1120  ;;  %737 = vst [vmem:[%s1462_s17 + $0x2b8] sm:$0xff] %v609_v50  ;;  %v611_v58 = vmul.f32 10000.0, %v445_v51  ;;  %v449_v59 = vmul.f32 %v1119_v53, %v1900_v4  ;;  %1140 = vrcp.f32 %v1966_v48  ;;  %v1996_v4 = vld [vmem:[%s1415_s30 + $0x358] sm:$0xff] }
  0xa0   : > { %v1123_v61 = vpop.eup %1122  ;;  %738 = vst [vmem:[%s1462_s17 + $0x2c0] sm:$0xff] %v610_v54  ;;  %v612_v62 = vmul.f32 10000.0, %v447_v55  ;;  %v451_v63 = vmul.f32 %v1121_v57, %v1906_v8  ;;  %1142 = vrcp.f32 %v1972_v52  ;;  %v2002_v8 = vld [vmem:[%s1415_s30 + $0x360] sm:$0xff] }
  0xa1   : > { %v1125_v1 = vpop.eup %1124  ;;  %739 = vst [vmem:[%s1462_s17 + $0x2c8] sm:$0xff] %v611_v58  ;;  %v613_v2 = vmul.f32 10000.0, %v449_v59  ;;  %v453_v3 = vmul.f32 %v1123_v61, %v1912_v12  ;;  %1144 = vrcp.f32 %v1978_v56  ;;  %v2008_v12 = vld [vmem:[%s1415_s30 + $0x368] sm:$0xff] }
  0xa2   : > { %v1127_v5 = vpop.eup %1126  ;;  %740 = vst [vmem:[%s1462_s17 + $0x2d0] sm:$0xff] %v612_v62  ;;  %v614_v6 = vmul.f32 10000.0, %v451_v63  ;;  %v455_v7 = vmul.f32 %v1125_v1, %v1918_v16  ;;  %1146 = vrcp.f32 %v1984_v60  ;;  %v2014_v16 = vld [vmem:[%s1415_s30 + $0x370] sm:$0xff] }
  0xa3   : > { %v1129_v9 = vpop.eup %1128  ;;  %741 = vst [vmem:[%s1462_s17 + $0x2d8] sm:$0xff] %v613_v2  ;;  %v615_v10 = vmul.f32 10000.0, %v453_v3  ;;  %v457_v11 = vmul.f32 %v1127_v5, %v1924_v20  ;;  %1148 = vrcp.f32 %v1990_v0  ;;  %v2020_v20 = vld [vmem:[%s1415_s30 + $0x378] sm:$0xff] }
  0xa4   : > { %v1131_v13 = vpop.eup %1130  ;;  %742 = vst [vmem:[%s1462_s17 + $0x2e0] sm:$0xff] %v614_v6  ;;  %v616_v14 = vmul.f32 10000.0, %v455_v7  ;;  %v459_v15 = vmul.f32 %v1129_v9, %v1930_v24  ;;  %1150 = vrcp.f32 %v1996_v4  ;;  %v2026_v24 = vld [vmem:[%s1415_s30 + $0x380] sm:$0xff] }
  0xa5   : > { %v1133_v17 = vpop.eup %1132  ;;  %743 = vst [vmem:[%s1462_s17 + $0x2e8] sm:$0xff] %v615_v10  ;;  %v617_v18 = vmul.f32 10000.0, %v457_v11  ;;  %v461_v19 = vmul.f32 %v1131_v13, %v1936_v28  ;;  %1152 = vrcp.f32 %v2002_v8  ;;  %v2032_v28 = vld [vmem:[%s1415_s30 + $0x388] sm:$0xff] }
  0xa6   : > { %v1135_v21 = vpop.eup %1134  ;;  %744 = vst [vmem:[%s1462_s17 + $0x2f0] sm:$0xff] %v616_v14  ;;  %v618_v22 = vmul.f32 10000.0, %v459_v15  ;;  %v463_v23 = vmul.f32 %v1133_v17, %v1942_v32  ;;  %1154 = vrcp.f32 %v2008_v12  ;;  %v2038_v32 = vld [vmem:[%s1415_s30 + $0x390] sm:$0xff] }
  0xa7   : > { %v1137_v25 = vpop.eup %1136  ;;  %745 = vst [vmem:[%s1462_s17 + $0x2f8] sm:$0xff] %v617_v18  ;;  %v619_v26 = vmul.f32 10000.0, %v461_v19  ;;  %v465_v27 = vmul.f32 %v1135_v21, %v1948_v36  ;;  %1156 = vrcp.f32 %v2014_v16  ;;  %v2044_v36 = vld [vmem:[%s1415_s30 + $0x398] sm:$0xff] }
  0xa8   : > { %v1139_v29 = vpop.eup %1138  ;;  %746 = vst [vmem:[%s1462_s17 + $0x300] sm:$0xff] %v618_v22  ;;  %v620_v30 = vmul.f32 10000.0, %v463_v23  ;;  %v467_v31 = vmul.f32 %v1137_v25, %v1954_v40  ;;  %1158 = vrcp.f32 %v2020_v20  ;;  %v2050_v40 = vld [vmem:[%s1415_s30 + $0x3a0] sm:$0xff] }
  0xa9   : > { %v1141_v33 = vpop.eup %1140  ;;  %747 = vst [vmem:[%s1462_s17 + $0x308] sm:$0xff] %v619_v26  ;;  %v621_v34 = vmul.f32 10000.0, %v465_v27  ;;  %v469_v35 = vmul.f32 %v1139_v29, %v1960_v44  ;;  %1160 = vrcp.f32 %v2026_v24  ;;  %v2056_v44 = vld [vmem:[%s1415_s30 + $0x3a8] sm:$0xff] }
  0xaa   : > { %v1143_v37 = vpop.eup %1142  ;;  %748 = vst [vmem:[%s1462_s17 + $0x310] sm:$0xff] %v620_v30  ;;  %v622_v38 = vmul.f32 10000.0, %v467_v31  ;;  %v471_v39 = vmul.f32 %v1141_v33, %v1966_v48  ;;  %1162 = vrcp.f32 %v2032_v28  ;;  %v2062_v48 = vld [vmem:[%s1415_s30 + $0x3b0] sm:$0xff] }
  0xab   : > { %v1145_v41 = vpop.eup %1144  ;;  %749 = vst [vmem:[%s1462_s17 + $0x318] sm:$0xff] %v621_v34  ;;  %v623_v42 = vmul.f32 10000.0, %v469_v35  ;;  %v473_v43 = vmul.f32 %v1143_v37, %v1972_v52  ;;  %1164 = vrcp.f32 %v2038_v32  ;;  %v2068_v52 = vld [vmem:[%s1415_s30 + $0x3b8] sm:$0xff] }
  0xac   : > { %v1147_v45 = vpop.eup %1146  ;;  %750 = vst [vmem:[%s1462_s17 + $0x320] sm:$0xff] %v622_v38  ;;  %v624_v46 = vmul.f32 10000.0, %v471_v39  ;;  %v475_v47 = vmul.f32 %v1145_v41, %v1978_v56  ;;  %1166 = vrcp.f32 %v2044_v36  ;;  %v2074_v56 = vld [vmem:[%s1415_s30 + $0x3c0] sm:$0xff] }
  0xad   : > { %v1149_v49 = vpop.eup %1148  ;;  %751 = vst [vmem:[%s1462_s17 + $0x328] sm:$0xff] %v623_v42  ;;  %v625_v50 = vmul.f32 10000.0, %v473_v43  ;;  %v477_v51 = vmul.f32 %v1147_v45, %v1984_v60  ;;  %1168 = vrcp.f32 %v2050_v40  ;;  %v2080_v60 = vld [vmem:[%s1415_s30 + $0x3c8] sm:$0xff] }
  0xae   : > { %v1151_v53 = vpop.eup %1150  ;;  %752 = vst [vmem:[%s1462_s17 + $0x330] sm:$0xff] %v624_v46  ;;  %v626_v54 = vmul.f32 10000.0, %v475_v47  ;;  %v479_v55 = vmul.f32 %v1149_v49, %v1990_v0  ;;  %1170 = vrcp.f32 %v2056_v44  ;;  %v2086_v0 = vld [vmem:[%s1415_s30 + $0x3d0] sm:$0xff] }
  0xaf   : > { %v1153_v57 = vpop.eup %1152  ;;  %753 = vst [vmem:[%s1462_s17 + $0x338] sm:$0xff] %v625_v50  ;;  %v627_v58 = vmul.f32 10000.0, %v477_v51  ;;  %v481_v59 = vmul.f32 %v1151_v53, %v1996_v4  ;;  %1172 = vrcp.f32 %v2062_v48  ;;  %v2092_v4 = vld [vmem:[%s1415_s30 + $0x3d8] sm:$0xff] }
  0xb0   : > { %v1155_v61 = vpop.eup %1154  ;;  %754 = vst [vmem:[%s1462_s17 + $0x340] sm:$0xff] %v626_v54  ;;  %v628_v62 = vmul.f32 10000.0, %v479_v55  ;;  %v483_v63 = vmul.f32 %v1153_v57, %v2002_v8  ;;  %1174 = vrcp.f32 %v2068_v52  ;;  %v2098_v8 = vld [vmem:[%s1415_s30 + $0x3e0] sm:$0xff] }
  0xb1   : > { %v1157_v1 = vpop.eup %1156  ;;  %755 = vst [vmem:[%s1462_s17 + $0x348] sm:$0xff] %v627_v58  ;;  %v629_v2 = vmul.f32 10000.0, %v481_v59  ;;  %v485_v3 = vmul.f32 %v1155_v61, %v2008_v12  ;;  %1176 = vrcp.f32 %v2074_v56  ;;  %v2104_v12 = vld [vmem:[%s1415_s30 + $0x3e8] sm:$0xff] }
  0xb2   : > { %v1159_v5 = vpop.eup %1158  ;;  %756 = vst [vmem:[%s1462_s17 + $0x350] sm:$0xff] %v628_v62  ;;  %v630_v6 = vmul.f32 10000.0, %v483_v63  ;;  %v487_v7 = vmul.f32 %v1157_v1, %v2014_v16  ;;  %1178 = vrcp.f32 %v2080_v60  ;;  %v2110_v16 = vld [vmem:[%s1415_s30 + $0x3f0] sm:$0xff] }
  0xb3   : > { %v1161_v9 = vpop.eup %1160  ;;  %757 = vst [vmem:[%s1462_s17 + $0x358] sm:$0xff] %v629_v2  ;;  %v631_v10 = vmul.f32 10000.0, %v485_v3  ;;  %v489_v11 = vmul.f32 %v1159_v5, %v2020_v20  ;;  %1180 = vrcp.f32 %v2086_v0  ;;  %v265_v20 = vld [vmem:[%s1415_s30 + $0x3f8] sm:$0xff] }
  0xb4   : > { %v1163_v13 = vpop.eup %1162  ;;  %758 = vst [vmem:[%s1462_s17 + $0x360] sm:$0xff] %v630_v6  ;;  %v632_v14 = vmul.f32 10000.0, %v487_v7  ;;  %v491_v15 = vmul.f32 %v1161_v9, %v2026_v24  ;;  %1182 = vrcp.f32 %v2092_v4 }
  0xb5   : > { %v1165_v17 = vpop.eup %1164  ;;  %759 = vst [vmem:[%s1462_s17 + $0x368] sm:$0xff] %v631_v10  ;;  %v633_v18 = vmul.f32 10000.0, %v489_v11  ;;  %v493_v19 = vmul.f32 %v1163_v13, %v2032_v28  ;;  %1184 = vrcp.f32 %v2098_v8 }
  0xb6   : > { %v1167_v21 = vpop.eup %1166  ;;  %760 = vst [vmem:[%s1462_s17 + $0x370] sm:$0xff] %v632_v14  ;;  %v634_v22 = vmul.f32 10000.0, %v491_v15  ;;  %v495_v23 = vmul.f32 %v1165_v17, %v2038_v32  ;;  %1186 = vrcp.f32 %v2104_v12 }
  0xb7   : > { %v1169_v24 = vpop.eup %1168  ;;  %761 = vst [vmem:[%s1462_s17 + $0x378] sm:$0xff] %v633_v18  ;;  %v635_v25 = vmul.f32 10000.0, %v493_v19  ;;  %v497_v26 = vmul.f32 %v1167_v21, %v2044_v36  ;;  %1188 = vrcp.f32 %v2110_v16 }
  0xb8   : > { %v1171_v27 = vpop.eup %1170  ;;  %762 = vst [vmem:[%s1462_s17 + $0x380] sm:$0xff] %v634_v22  ;;  %v636_v28 = vmul.f32 10000.0, %v495_v23  ;;  %v499_v29 = vmul.f32 %v1169_v24, %v2050_v40  ;;  %1190 = vrcp.f32 %v265_v20 }
  0xb9   : > { %v1173_v30 = vpop.eup %1172  ;;  %763 = vst [vmem:[%s1462_s17 + $0x388] sm:$0xff] %v635_v25  ;;  %v637_v31 = vmul.f32 10000.0, %v497_v26  ;;  %v501_v32 = vmul.f32 %v1171_v27, %v2056_v44 }
  0xba   : > { %v1175_v33 = vpop.eup %1174  ;;  %764 = vst [vmem:[%s1462_s17 + $0x390] sm:$0xff] %v636_v28  ;;  %v638_v34 = vmul.f32 10000.0, %v499_v29  ;;  %v503_v35 = vmul.f32 %v1173_v30, %v2062_v48 }
  0xbb   : > { %v1177_v36 = vpop.eup %1176  ;;  %765 = vst [vmem:[%s1462_s17 + $0x398] sm:$0xff] %v637_v31  ;;  %v639_v37 = vmul.f32 10000.0, %v501_v32  ;;  %v505_v38 = vmul.f32 %v1175_v33, %v2068_v52 }
  0xbc   : > { %v1179_v39 = vpop.eup %1178  ;;  %766 = vst [vmem:[%s1462_s17 + $0x3a0] sm:$0xff] %v638_v34  ;;  %v640_v40 = vmul.f32 10000.0, %v503_v35  ;;  %v507_v41 = vmul.f32 %v1177_v36, %v2074_v56 }
  0xbd   : > { %v1181_v42 = vpop.eup %1180  ;;  %767 = vst [vmem:[%s1462_s17 + $0x3a8] sm:$0xff] %v639_v37  ;;  %v641_v43 = vmul.f32 10000.0, %v505_v38  ;;  %v509_v44 = vmul.f32 %v1179_v39, %v2080_v60 }
  0xbe   : > { %v1183_v45 = vpop.eup %1182  ;;  %768 = vst [vmem:[%s1462_s17 + $0x3b0] sm:$0xff] %v640_v40  ;;  %v642_v46 = vmul.f32 10000.0, %v507_v41  ;;  %v511_v47 = vmul.f32 %v1181_v42, %v2086_v0 }
  0xbf   : > { %v1185_v48 = vpop.eup %1184  ;;  %769 = vst [vmem:[%s1462_s17 + $0x3b8] sm:$0xff] %v641_v43  ;;  %v643_v49 = vmul.f32 10000.0, %v509_v44  ;;  %v513_v50 = vmul.f32 %v1183_v45, %v2092_v4 }
  0xc0   : > { %v1187_v51 = vpop.eup %1186  ;;  %770 = vst [vmem:[%s1462_s17 + $0x3c0] sm:$0xff] %v642_v46  ;;  %v644_v52 = vmul.f32 10000.0, %v511_v47  ;;  %v515_v53 = vmul.f32 %v1185_v48, %v2098_v8 }
  0xc1   : > { %v1189_v54 = vpop.eup %1188  ;;  %771 = vst [vmem:[%s1462_s17 + $0x3c8] sm:$0xff] %v643_v49  ;;  %v645_v55 = vmul.f32 10000.0, %v513_v50  ;;  %v517_v56 = vmul.f32 %v1187_v51, %v2104_v12 }
  0xc2   : > { %v1191_v57 = vpop.eup %1190  ;;  %772 = vst [vmem:[%s1462_s17 + $0x3d0] sm:$0xff] %v644_v52  ;;  %v646_v58 = vmul.f32 10000.0, %v515_v53  ;;  %v519_v59 = vmul.f32 %v1189_v54, %v2110_v16 }
  0xc3   : > { %773 = vst [vmem:[%s1462_s17 + $0x3d8] sm:$0xff] %v645_v55  ;;  %v647_v60 = vmul.f32 10000.0, %v517_v56  ;;  %v521_v61 = vmul.f32 %v1191_v57, %v265_v20 }
  0xc4   : > { %774 = vst [vmem:[%s1462_s17 + $0x3e0] sm:$0xff] %v646_v58  ;;  %v648_v62 = vmul.f32 10000.0, %v519_v59 }
  0xc5   : > { %775 = vst [vmem:[%s1462_s17 + $0x3e8] sm:$0xff] %v647_v60  ;;  %v649_v63 = vmul.f32 10000.0, %v521_v61 }
  0xc6   : > { %776 = vst [vmem:[%s1462_s17 + $0x3f0] sm:$0xff] %v648_v62 }
  0xc7   : > { %777 = vst [vmem:[%s1462_s17 + $0x3f8] sm:$0xff] %v649_v63 }
  0xc8   : > { %1235 = shalt.err (!%p1232_p1)
}
  0xc9   : > { %s1236_s13 = scalar_lea.hbm %s2151_s2, 16384  ;;  %s1240_s20 = scalar_lea.hbm %s2200_s1, 65536 }
  0xca   : > { %p1237_p3 = scmp.ne.s32.totalorder %s2151_s2, %s1236_s13  ;;  %p1241_p0 = scmp.lt.u32.totalorder %s2151_s2, %s2200_s1 }
  0xcb   : > { %p1242_p2 = scmp.lt.u32.totalorder %s1240_s20, %s1236_s13  ;;  %p1244_p6 = scmp.lt.u32.totalorder %s1236_s13, %s2151_s2 }
  0xcc   : > { %p1238_p4 = pnand %p1237_p3, %p2207_p10 }
  0xcd   : > { %p1243_p7 = por %p1242_p2, %p1241_p0 }
  0xce   : > { %p1239_p5 = pneg %p1238_p4 }
  0xcf   : > { %p1245_p11 = por %p1244_p6, %p1243_p7 }
  0xd1   : > { %p1246_p12 = pnand %p1245_p11, %p1239_p5 }
  0xd3   : > { %1249 = shalt.err (!%p1246_p12)
}
  0xd4   : > { %s1294_s24 = smov 512   ;;  %s1295_s26 = smov 32  }
  0xd5   : > { %888 = dma.vmem_to_hbm [thread:$0]  (%p2207_p10), %s2153_s27, 16384, %s2151_s2, %s779_s10, %s1294_s24, %s1294_s24, %s1295_s26  }
  0xd6 PF: > { %p899_p8 = scmp.ge.s32.totalorder %s1288_s9, 2  ;;  %s808_s30 = sand.u32 1, %s1276_s6  }
  0xd7   : > { %p2208_p9 = scmp.ne.s32.totalorder %s2205_s19, 0  ;;  %s809_s17 = scalar_lea.sflag [#allocation4], %s808_s30 }
  0xd9   : > { %p895_p13 = pnand %p899_p8, %p2208_p9 }
  0xdb   : > { %1271 = dma.done.wait (!%p895_p13), %s809_s17, 16384  }
  0xdc   : > { %1273 = vsyncadd (!%p895_p13), %s809_s17, 4294950912  ;;  %p14_p1 = scmp.ge.s32.totalorder %s1331_s12, 6   ;;  %s2209_s6 = smov %s1280_s7 }
  0xdd   : > { %s2210_s7 = smov %s1284_s8  ;;  %s2211_s8 = smov %s1343_s15 }
  0xde   : > { %s2212_s9 = smov %s1331_s12  ;;  %16 = sbr.rel (!%p14_p1) target bundleno = 5 (0x5), region = 69 }
  0xe5   :  { %814 = vsyncpa [#allocation3], 1 }
  0xe6   :  { %816 = vsyncpa [#allocation3 + $0x1], 1 }
  0xe7   :  { %817 = vsyncpa [#allocation4], 1 }
  0xe8   :  { %819 = vsyncpa [#allocation4 + $0x1], 1 }

</bundles_post_ra>
